<compile_context>
chip_gen: v5e
topology: v5e:2x2
jax: 0.10.0
libtpu: 0.0.40
codegen_flags: <defaults>
</compile_context>

<pallas_src>
import math
from functools import partial

import jax
import jax.numpy as jnp
from jax.experimental import pallas as pl
from jax.experimental.pallas import tpu as pltpu


# ----------------------------------------------------------------------------
# Parameter setup (plain JAX): the fixed sinusoidal table from __init__.
# ----------------------------------------------------------------------------
def make_positional_encoding(d_model: int, max_len: int = 1024,
                             scale_factor: float = 1.0) -> jnp.ndarray:
    position = jnp.arange(max_len, dtype=jnp.float32)[:, None]            # [L, 1]
    div_term = jnp.exp(
        jnp.arange(0, d_model, 2, dtype=jnp.float32)
        * (-math.log(10000.0) / d_model))                                 # [D/2]
    pe = jnp.zeros((max_len, d_model), dtype=jnp.float32)
    pe = pe.at[:, 0::2].set(jnp.sin(position * div_term))
    pe = pe.at[:, 1::2].set(jnp.cos(position * div_term))
    return scale_factor * pe                                              # [L, D]


# ----------------------------------------------------------------------------
# Kernels: operate on lane-dense 2D views [rows = S, cols = B*D].
# ----------------------------------------------------------------------------
def _pe_add_kernel(x_ref, pe_ref, o_ref):
    # eval mode (or p == 0): dropout is the identity
    o_ref[...] = (x_ref[...] + pe_ref[...]).astype(o_ref.dtype)


def _pe_add_dropout_kernel(x_ref, pe_ref, bits_ref, o_ref, *, threshold, inv_keep):
    # Inverted dropout (torch.nn.Dropout train mode): keep with prob 1-p,
    # scale kept values by 1/(1-p).  keep <=> bits >= round(p * 2**32).
    y = x_ref[...] + pe_ref[...]
    keep = bits_ref[...] >= jnp.uint32(threshold)
    scale = jnp.asarray(inv_keep, dtype=y.dtype)
    o_ref[...] = jnp.where(keep, y * scale, jnp.zeros_like(y)).astype(o_ref.dtype)


# ----------------------------------------------------------------------------
# Tiling helper: largest row tile that is a multiple of 8, divides S, keeps one
# block around ~2 MiB (headroom for double-buffering on v7x's 64 MiB VMEM), and
# is capped at 512 rows.  Falls back to the full row extent (always legal).
# ----------------------------------------------------------------------------
def _row_tile(n_rows: int, n_cols: int, itemsize: int,
              target_rows: int = 512, target_bytes: int = 2 << 20) -> int:
    if n_rows <= 8:
        return n_rows
    bytes_per_row = max(1, n_cols * itemsize)
    cap = max(8, min(target_rows, target_bytes // bytes_per_row))
    t = min(n_rows, (cap // 8) * 8)
    t = max(t, 8)
    while t >= 8:
        if n_rows % t == 0:
            return t
        t -= 8
    return n_rows


# ----------------------------------------------------------------------------
# Wrapper: out = dropout(x + pe[:S])  with x: [S, B, D], pe_table: [max_len, D]
# ----------------------------------------------------------------------------
def fixed_positional_encoding(x: jnp.ndarray,
                              pe_table: jnp.ndarray,
                              *,
                              p: float = 0.1,
                              training: bool = True,
                              dropout_key=None) -> jnp.ndarray:
    S, B, D = x.shape
    C = B * D
    dtype = x.dtype

    # Lane-dense 2D views: x -> [S, B*D]; pe broadcast over batch (done once per
    # shape; pe is a fixed buffer) -> [S, B*D], cast to the compute dtype.
    x2d = x.reshape(S, C)
    pe2d = jnp.broadcast_to(
        pe_table[:S, :].astype(dtype)[:, None, :], (S, B, D)).reshape(S, C)

    apply_dropout = bool(training) and float(p) > 0.0
    if apply_dropout and float(p) >= 1.0:
        # torch.nn.Dropout(p=1.0) in train mode zeroes everything.
        return jnp.zeros_like(x)

    ts = _row_tile(S, C, jnp.dtype(dtype).itemsize)
    grid = (pl.cdiv(S, ts),)                      # ts divides S (or ts == S)
    tile_spec = pl.BlockSpec((ts, C), lambda i: (i, 0))
    cparams = pltpu.CompilerParams(
        dimension_semantics=("parallel",),        # elementwise: both TCs on v7x
        vmem_limit_bytes=64 * 1024 * 1024,
    )

    if apply_dropout:
        if dropout_key is None:
            dropout_key = jax.random.PRNGKey(0)
        bits = jax.random.bits(dropout_key, (S, C), dtype=jnp.uint32)
        threshold = min(int(round(float(p) * (1 << 32))), (1 << 32) - 1)
        inv_keep = 1.0 / (1.0 - float(p))
        kernel = partial(_pe_add_dropout_kernel,
                         threshold=threshold, inv_keep=inv_keep)
        out2d = pl.pallas_call(
            kernel,
            out_shape=jax.ShapeDtypeStruct((S, C), dtype),
            grid=grid,
            in_specs=[tile_spec, tile_spec,
                      pl.BlockSpec((ts, C), lambda i: (i, 0))],
            out_specs=pl.BlockSpec((ts, C), lambda i: (i, 0)),
            compiler_params=cparams,
        )(x2d, pe2d, bits)
    else:
        out2d = pl.pallas_call(
            _pe_add_kernel,
            out_shape=jax.ShapeDtypeStruct((S, C), dtype),
            grid=grid,
            in_specs=[tile_spec, tile_spec],
            out_specs=pl.BlockSpec((ts, C), lambda i: (i, 0)),
            compiler_params=cparams,
        )(x2d, pe2d)

    return out2d.reshape(S, B, D)


# ----------------------------------------------------------------------------
if __name__ == "__main__":
    S, B, D = 16, 4, 32        # seq len, batch, embed dim  (lane dim B*D = 128)
    MAX_LEN = 64
    DROPOUT_P = 0.1
    SCALE = 1.0

    key = jax.random.PRNGKey(0)
    kx, kd = jax.random.split(key)
    x = jax.random.normal(kx, (S, B, D), dtype=jnp.float32)

    pe_table = make_positional_encoding(D, max_len=MAX_LEN, scale_factor=SCALE)
    ref = x + pe_table[:S, :][:, None, :]

    # 1) eval-mode path (dropout is identity) -> must equal x + pe
    y_eval = jax.block_until_ready(
        fixed_positional_encoding(x, pe_table, p=DROPOUT_P, training=False))
    assert y_eval.shape == (S, B, D)
    assert jnp.allclose(y_eval, ref, atol=1e-6), "eval-mode mismatch vs x + pe"

    # 2) train-mode path (inverted dropout): dropped entries are exactly zero,
    #    kept entries equal ref / (1 - p).
    y_train = jax.block_until_ready(
        fixed_positional_encoding(x, pe_table, p=DROPOUT_P,
                                  training=True, dropout_key=kd))
    assert y_train.shape == (S, B, D)
    kept = y_train != 0.0
    assert jnp.allclose(jnp.where(kept, y_train * (1.0 - DROPOUT_P), 0.0),
                        jnp.where(kept, ref, 0.0), atol=1e-5)
    drop_frac = 1.0 - float(jnp.mean(kept.astype(jnp.float32)))
    assert 0.0 <= drop_frac < 0.35, "implausible dropout rate"

    print("KERNEL_OK")
</pallas_src>

<mosaic_0001>
module attributes {stable_mosaic.version = 11 : i64} {
  func.func @_pe_add_kernel(%arg0: i32, %arg1: memref<16x128xf32, #tpu.memory_space<vmem>>, %arg2: memref<16x128xf32, #tpu.memory_space<vmem>>, %arg3: memref<16x128xf32, #tpu.memory_space<vmem>>) attributes {dimension_semantics = [#tpu.dimension_semantics<parallel>], iteration_bounds = array<i64: 1>, scalar_prefetch = 0 : i64, scratch_operands = 0 : i64, tpu.core_type = #tpu.core_type<tc>, window_params = [{transform_indices = @transform_0, window_bounds = array<i64: 16, 128>}, {transform_indices = @transform_1, window_bounds = array<i64: 16, 128>}, {transform_indices = @transform_2, window_bounds = array<i64: 16, 128>}]} {
    %c0 = arith.constant 0 : index
    %c0_0 = arith.constant 0 : index
    %0 = vector.load %arg1[%c0, %c0_0] : memref<16x128xf32, #tpu.memory_space<vmem>>, vector<16x128xf32>
    %c0_1 = arith.constant 0 : index
    %c0_2 = arith.constant 0 : index
    %1 = vector.load %arg2[%c0_1, %c0_2] : memref<16x128xf32, #tpu.memory_space<vmem>>, vector<16x128xf32>
    %2 = arith.addf %0, %1 : vector<16x128xf32>
    %c0_3 = arith.constant 0 : index
    %c0_4 = arith.constant 0 : index
    %3 = vector.load %arg3[%c0_3, %c0_4] : memref<16x128xf32, #tpu.memory_space<vmem>>, vector<16x128xf32>
    tpu.vector_store %arg3[%c0_3, %c0_4], %2 {strides = array<i32>} : memref<16x128xf32, #tpu.memory_space<vmem>>, vector<16x128xf32>,
    return
  }
  func.func @transform_0(%arg0: i32) -> (i32, i32) {
    %c0_i32 = arith.constant 0 : i32
    %c0_i32_0 = arith.constant 0 : i32
    return %arg0, %c0_i32 : i32, i32
  }
  func.func @transform_1(%arg0: i32) -> (i32, i32) {
    %c0_i32 = arith.constant 0 : i32
    %c0_i32_0 = arith.constant 0 : i32
    return %arg0, %c0_i32 : i32, i32
  }
  func.func @transform_2(%arg0: i32) -> (i32, i32) {
    %c0_i32 = arith.constant 0 : i32
    %c0_i32_0 = arith.constant 0 : i32
    return %arg0, %c0_i32 : i32, i32
  }
}

</mosaic_0001>

<bundles_post_ra>
// kernel: tpu_custom_call.1
= control target key start
LH: loop header
LB: loop body
LE: loop exit
PB: predicated region body
PF: predicated region fallthrough
CT: control target
= control target key end

     0   :  { %7 = vsyncpa [#allocation3], 0  ;;  %s184_s0 = inlined_call_operand.hbm [shape: f32[16,128], index: 0, kind: input, shape index: {}]   ;;  %s185_s1 = inlined_call_operand.hbm [shape: f32[16,128], index: 1, kind: input, shape index: {}]   ;;  %s186_s2 = inlined_call_operand.hbm [shape: f32[16,128], index: 2, kind: output, shape index: {}]  }
   0x1   :  { %8 = vsyncpa [#allocation6], 0 }
   0x2   :  { %9 = vsyncpa [#allocation4], 0  ;;  %s14_s11 = sshll.u32 %s184_s0, 4  ;;  %s155_s12 = smov [#allocation2]   ;;  %s15_s11 = int_to_ptr.hbm [resolvable:$true] %s14_s11 }
   0x3   :  { %s16_s13 = sshll.u32 %s155_s12, 4  ;;  %s27_s16 = sshll.u32 %s185_s1, 4  ;;  %s17_s13 = int_to_ptr.vmem [resolvable:$true] %s16_s13  ;;  %s28_s16 = int_to_ptr.hbm [resolvable:$true] %s27_s16 }
   0x4   :  { %s156_s17 = smov 128   ;;  %s157_s18 = smov 8  }
   0x5   :  { %22 = dma.hbm_to_vmem [thread:$0]  %s15_s11, 256, %s17_s13, [#allocation3], %s156_s17, %s156_s17, %s157_s18  }
   0x6   :  { %s158_s19 = smov [#allocation5]  }
   0x7   :  { %s29_s20 = sshll.u32 %s158_s19, 4  ;;  %s30_s20 = int_to_ptr.vmem [resolvable:$true] %s29_s20 }
   0x8   :  { %35 = dma.hbm_to_vmem [thread:$0]  %s28_s16, 256, %s30_s20, [#allocation6], %s156_s17, %s156_s17, %s157_s18  }
   0x9   :  { %149 = dma.done.wait [#allocation3], 256  }
   0xa   :  { %150 = vsyncadd [#allocation3], 4294967040 }
   0xb   :  { %151 = dma.done.wait [#allocation6], 256  }
   0xc   :  { %152 = vsyncadd [#allocation6], 4294967040  ;;  %s159_s0 = smov [#allocation7]   ;;  %s58_s24 = sshll.u32 %s186_s2, 4  ;;  %v44_v0 = vld [vmem:[#allocation2] sm:$0xff]  ;;  %v46_v1 = vld [vmem:[#allocation5] sm:$0xff]  ;;  %s59_s24 = int_to_ptr.hbm [resolvable:$true] %s58_s24 }
   0xd   :  { %s56_s21 = sshll.u32 %s159_s0, 4  ;;  %v45_v2 = vld [vmem:[#allocation2 + $0x8] sm:$0xff]  ;;  %v48_v3 = vadd.f32 %v46_v1, %v44_v0  ;;  %v47_v4 = vld [vmem:[#allocation5 + $0x8] sm:$0xff]  ;;  %s57_s21 = int_to_ptr.vmem [resolvable:$true] %s56_s21 }
   0xe   :  { %v49_v5 = vadd.f32 %v47_v4, %v45_v2 }
   0xf   :  { %50 = vst [vmem:[#allocation7] sm:$0xff] %v48_v3 }
  0x10   :  { %51 = vst [vmem:[#allocation7 + $0x8] sm:$0xff] %v49_v5 }
  0x11   :  { %64 = dma.vmem_to_hbm [thread:$0]  %s57_s21, 256, %s59_s24, [#allocation4], %s156_s17, %s156_s17, %s157_s18  }
  0x12   :  { %153 = dma.done.wait [#allocation4], 256  }
  0x13   :  { %154 = vsyncadd [#allocation4], 4294967040 }
  0x14   :  { %69 = vsyncpa [#allocation3], 1 }
  0x15   :  { %70 = vsyncpa [#allocation6], 1 }
  0x16   :  { %71 = vsyncpa [#allocation4], 1 }

</bundles_post_ra>
